<compile_context>
chip_gen: v7x
topology: tpu7x:2x2x1
jax: 0.10.0
libtpu: 0.0.40
codegen_flags: <defaults>
</compile_context>

<pallas_src>
from functools import partial

import jax
import jax.numpy as jnp
from jax.experimental import pallas as pl
from jax.experimental.pallas import tpu as pltpu


def _round_up(a, b):
    return (a + b - 1) // b * b


def _conv_tile_kernel(w_ref, b_ref, sp_ref, out_ref, xq_ref, *, kH, kW, Th, Lout):
    """One output row-tile of the lane-packed direct convolution.

    w_ref  : VMEM (kH*kW, Lout) f32      flipped taps, one value per output lane
    b_ref  : SMEM (1,)          f32      bias scalar (out_channels == 1)
    sp_ref : VMEM (Th+kH-1, Lout+kW-1)   padded-signal rows for this tile (+halo)
    out_ref: VMEM (Th, Lout)             packed outputs (lane crop in wrapper)
    xq_ref : VMEM (Th+kH-1, Lout) f32    scratch: lane-shifted slab for current q
    """
    # Bias folded into the accumulator init.
    acc = jnp.full((Th, Lout), b_ref[0], dtype=jnp.float32)
    for q in range(kW):
        # Lane realignment once per kernel column; the shifted slab lands in
        # VMEM scratch so the per-tap row windows below are plain vld's
        # (sublane address offsets) instead of XLU sublane shifts per tap.
        xq_ref[...] = sp_ref[:, q:q + Lout].astype(jnp.float32)
        for p in range(kH):
            w_row = w_ref[pl.ds(p * kW + q, 1), :]          # (1, Lout) tap row
            acc = acc + w_row * xq_ref[pl.ds(p, Th), :]     # VPU MAC, full vregs
    out_ref[...] = acc.astype(out_ref.dtype)


def fft_conv2d_pallas(signal, weight, bias, *, padding=0, stride=1,
                      padding_mode="zeros", tile_h=256):
    """Pallas equivalent of _FFTConv.forward (out_channels == 1 broadcast case)."""
    assert padding_mode == "zeros"
    # The reference's stride_slices is dead code (never applied); refuse other
    # values instead of silently behaving like stride == 1.
    assert stride == 1, "stride != 1 is dead code in the reference; not supported"

    B, Cin, H, W = signal.shape
    Cout, Cin_w, kH, kW = weight.shape
    assert Cin_w == Cin and Cout == 1, "broadcast path only valid for Cout == 1"

    Hp, Wp = H + 2 * padding, W + 2 * padding
    Ho, Wo = Hp - kH + 1, Wp - kW + 1
    Nimg = B * Cin

    # ---- lane packing: image i = b*Cin + c occupies lanes [i*Wp, (i+1)*Wp) ----
    L_raw = Nimg * Wp
    Lout = _round_up(max(L_raw, 128), 128)     # lane-dense output width
    Lin = Lout + (kW - 1)                      # kW-1 tail lanes for the q-shift

    # ---- row tiling with (kH-1)-row halo ----
    Th = min(_round_up(Ho, 8), _round_up(tile_h, 8))   # output rows per tile
    Ho_pad = _round_up(Ho, Th)
    nT = Ho_pad // Th
    Tin = Th + kH - 1                                  # input rows per tile

    # ---- wrapper-side layout plumbing (plain JAX) ----
    sp = jnp.pad(signal, ((0, 0), (0, 0), (padding, padding), (padding, padding)))
    sp_packed = sp.reshape(Nimg, Hp, Wp).transpose(1, 0, 2).reshape(Hp, L_raw)
    sp_packed = jnp.pad(sp_packed,
                        ((0, Ho_pad + kH - 1 - Hp), (0, Lin - L_raw)))
    # Halo-duplicated row tiles: (nT, Tin, Lin). Duplication is kH-1 rows/tile.
    sp_tiles = jnp.stack([sp_packed[t * Th:t * Th + Tin] for t in range(nT)])

    # Spatially flipped taps, broadcast to per-output-lane rows:
    #   w_packed[p*kW + q, i*Wp + w] = weight[0, c(i), kH-1-p, kW-1-q]
    wf = weight[0, :, ::-1, ::-1].astype(jnp.float32)                  # (Cin,kH,kW)
    w_img = jnp.broadcast_to(wf[None], (B, Cin, kH, kW)).reshape(Nimg, kH, kW)
    w_lane = jnp.broadcast_to(w_img[:, None, :, :],
                              (Nimg, Wp, kH, kW)).reshape(L_raw, kH, kW)
    w_packed = w_lane.transpose(1, 2, 0).reshape(kH * kW, L_raw)
    w_packed = jnp.pad(w_packed, ((0, 0), (0, Lout - L_raw)))          # zero taps on pad lanes

    bias_f = bias.astype(jnp.float32).reshape(1)

    kernel = partial(_conv_tile_kernel, kH=kH, kW=kW, Th=Th, Lout=Lout)
    out_tiles = pl.pallas_call(
        kernel,
        out_shape=jax.ShapeDtypeStruct((nT, Th, Lout), signal.dtype),
        grid_spec=pltpu.PrefetchScalarGridSpec(
            num_scalar_prefetch=0,
            grid=(nT,),
            in_specs=[
                pl.BlockSpec((kH * kW, Lout), lambda t: (0, 0)),        # taps (VMEM)
                pl.BlockSpec(memory_space=pltpu.MemorySpace.SMEM),      # bias scalar
                pl.BlockSpec((None, Tin, Lin), lambda t: (t, 0, 0)),    # row tile + halo
            ],
            out_specs=pl.BlockSpec((None, Th, Lout), lambda t: (t, 0, 0)),
            scratch_shapes=[pltpu.VMEM((Tin, Lout), jnp.float32)],      # q-shifted slab
        ),
        compiler_params=pltpu.CompilerParams(
            dimension_semantics=("parallel",),      # tiles independent; 2x on v7x
            vmem_limit_bytes=64 * 1024 * 1024),
    )(w_packed, bias_f, sp_tiles)

    # Unpack: drop padded rows, keep first Wo lanes of each Wp-wide segment.
    # (The last kW-1 output lanes of each segment read into the neighbour image
    #  and MUST be discarded here -- packing invariant.)
    out_packed = out_tiles.reshape(Ho_pad, Lout)[:Ho, :L_raw]
    out = out_packed.reshape(Ho, Nimg, Wp)[:, :, :Wo]
    return jnp.transpose(out, (1, 0, 2)).reshape(B, Cin, Ho, Wo)


def fft_conv2d_reference(signal, weight, bias, *, padding=0):
    """Pure-JAX transliteration of the original torch fft_conv_nd (for checking)."""
    sp = jnp.pad(signal, ((0, 0), (0, 0), (padding, padding), (padding, padding)))
    Hp, Wp = sp.shape[2], sp.shape[3]
    kH, kW = weight.shape[2], weight.shape[3]
    kpad = jnp.pad(weight, ((0, 0), (0, 0), (0, Hp - kH), (0, Wp - kW)))
    out = jnp.fft.irfft2(jnp.fft.rfft2(kpad) * jnp.fft.rfft2(sp), s=(Hp, Wp))
    out = out[:, :, kH - 1:Hp, kW - 1:Wp]
    return out + bias.reshape(1, -1, 1, 1)


if __name__ == "__main__":
    # Module config (small, deterministic): in_channels=4, out_channels=1,
    # kernel_size=5, padding=2, stride=1, bias=True.
    B, Cin, H, W = 2, 4, 16, 16
    Cout, K, PAD = 1, 5, 2

    key = jax.random.PRNGKey(0)
    k_sig, k_w, k_b = jax.random.split(key, 3)
    signal = jax.random.normal(k_sig, (B, Cin, H, W), dtype=jnp.float32)
    weight = jax.random.normal(k_w, (Cout, Cin, K, K), dtype=jnp.float32) * 0.1
    bias = jax.random.normal(k_b, (Cout,), dtype=jnp.float32)

    # tile_h=8 -> 2 row tiles at this scale, exercising the halo'd tiling path.
    out = fft_conv2d_pallas(signal, weight, bias, padding=PAD, stride=1, tile_h=8)
    out = jax.block_until_ready(out)

    ref = jax.block_until_ready(
        fft_conv2d_reference(signal, weight, bias, padding=PAD))

    assert out.shape == (B, Cin, H, W), out.shape
    assert jnp.allclose(out, ref, rtol=1e-4, atol=1e-4), \
        float(jnp.max(jnp.abs(out - ref)))
    print("KERNEL_OK")
</pallas_src>

<mosaic_0001>
module attributes {stable_mosaic.version = 11 : i64} {
  func.func @_conv_tile_kernel(%arg0: i32, %arg1: memref<25x256xf32, #tpu.memory_space<vmem>>, %arg2: memref<1xf32, #tpu.memory_space<smem>>, %arg3: memref<1x12x260xf32, #tpu.memory_space<vmem>>, %arg4: memref<1x8x256xf32, #tpu.memory_space<vmem>>, %arg5: memref<12x256xf32, #tpu.memory_space<vmem>>) attributes {dimension_semantics = [#tpu.dimension_semantics<parallel>], iteration_bounds = array<i64: 2>, scalar_prefetch = 0 : i64, scratch_operands = 1 : i64, tpu.core_type = #tpu.core_type<tc>, window_params = [{pipeline_mode = #tpu.pipeline_mode<synchronous>, transform_indices = @transform_0, window_bounds = array<i64: 25, 256>}, {transform_indices = @transform_1, window_bounds = array<i64: 1>}, {transform_indices = @transform_2, window_bounds = array<i64: 1, 12, 260>}, {transform_indices = @transform_3, window_bounds = array<i64: 1, 8, 256>}]} {
    %c0 = arith.constant 0 : index
    %0 = memref.load %arg2[%c0] : memref<1xf32, #tpu.memory_space<smem>>
    %1 = vector.broadcast %0 : f32 to vector<8x256xf32>
    %c0_0 = arith.constant 0 : index
    %c0_1 = arith.constant 0 : index
    %c0_2 = arith.constant 0 : index
    %2 = vector.load %arg3[%c0_0, %c0_1, %c0_2] : memref<1x12x260xf32, #tpu.memory_space<vmem>>, vector<1x12x256xf32>
    %3 = vector.shape_cast %2 : vector<1x12x256xf32> to vector<12x256xf32>
    %c0_3 = arith.constant 0 : index
    %c0_4 = arith.constant 0 : index
    %4 = vector.load %arg5[%c0_3, %c0_4] : memref<12x256xf32, #tpu.memory_space<vmem>>, vector<12x256xf32>
    tpu.vector_store %arg5[%c0_3, %c0_4], %3 {strides = array<i32>} : memref<12x256xf32, #tpu.memory_space<vmem>>, vector<12x256xf32>,
    %c0_5 = arith.constant 0 : index
    %c0_6 = arith.constant 0 : index
    %5 = vector.load %arg1[%c0_5, %c0_6] : memref<25x256xf32, #tpu.memory_space<vmem>>, vector<1x256xf32>
    %c0_7 = arith.constant 0 : index
    %c0_8 = arith.constant 0 : index
    %6 = vector.load %arg5[%c0_7, %c0_8] : memref<12x256xf32, #tpu.memory_space<vmem>>, vector<8x256xf32>
    %7 = vector.broadcast %5 : vector<1x256xf32> to vector<8x256xf32>
    %8 = arith.mulf %7, %6 : vector<8x256xf32>
    %9 = arith.addf %1, %8 : vector<8x256xf32>
    %c5 = arith.constant 5 : index
    %c0_9 = arith.constant 0 : index
    %10 = vector.load %arg1[%c5, %c0_9] : memref<25x256xf32, #tpu.memory_space<vmem>>, vector<1x256xf32>
    %c1 = arith.constant 1 : index
    %c0_10 = arith.constant 0 : index
    %11 = vector.load %arg5[%c1, %c0_10] : memref<12x256xf32, #tpu.memory_space<vmem>>, vector<8x256xf32>
    %12 = vector.broadcast %10 : vector<1x256xf32> to vector<8x256xf32>
    %13 = arith.mulf %12, %11 : vector<8x256xf32>
    %14 = arith.addf %9, %13 : vector<8x256xf32>
    %c10 = arith.constant 10 : index
    %c0_11 = arith.constant 0 : index
    %15 = vector.load %arg1[%c10, %c0_11] : memref<25x256xf32, #tpu.memory_space<vmem>>, vector<1x256xf32>
    %c2 = arith.constant 2 : index
    %c0_12 = arith.constant 0 : index
    %16 = vector.load %arg5[%c2, %c0_12] : memref<12x256xf32, #tpu.memory_space<vmem>>, vector<8x256xf32>
    %17 = vector.broadcast %15 : vector<1x256xf32> to vector<8x256xf32>
    %18 = arith.mulf %17, %16 : vector<8x256xf32>
    %19 = arith.addf %14, %18 : vector<8x256xf32>
    %c15 = arith.constant 15 : index
    %c0_13 = arith.constant 0 : index
    %20 = vector.load %arg1[%c15, %c0_13] : memref<25x256xf32, #tpu.memory_space<vmem>>, vector<1x256xf32>
    %c3 = arith.constant 3 : index
    %c0_14 = arith.constant 0 : index
    %21 = vector.load %arg5[%c3, %c0_14] : memref<12x256xf32, #tpu.memory_space<vmem>>, vector<8x256xf32>
    %22 = vector.broadcast %20 : vector<1x256xf32> to vector<8x256xf32>
    %23 = arith.mulf %22, %21 : vector<8x256xf32>
    %24 = arith.addf %19, %23 : vector<8x256xf32>
    %c20 = arith.constant 20 : index
    %c0_15 = arith.constant 0 : index
    %25 = vector.load %arg1[%c20, %c0_15] : memref<25x256xf32, #tpu.memory_space<vmem>>, vector<1x256xf32>
    %c4 = arith.constant 4 : index
    %c0_16 = arith.constant 0 : index
    %26 = vector.load %arg5[%c4, %c0_16] : memref<12x256xf32, #tpu.memory_space<vmem>>, vector<8x256xf32>
    %27 = vector.broadcast %25 : vector<1x256xf32> to vector<8x256xf32>
    %28 = arith.mulf %27, %26 : vector<8x256xf32>
    %29 = arith.addf %24, %28 : vector<8x256xf32>
    %c0_17 = arith.constant 0 : index
    %c0_18 = arith.constant 0 : index
    %c1_19 = arith.constant 1 : index
    %30 = vector.load %arg3[%c0_17, %c0_18, %c1_19] : memref<1x12x260xf32, #tpu.memory_space<vmem>>, vector<1x12x256xf32>
    %31 = vector.shape_cast %30 : vector<1x12x256xf32> to vector<12x256xf32>
    %c0_20 = arith.constant 0 : index
    %c0_21 = arith.constant 0 : index
    %32 = vector.load %arg5[%c0_20, %c0_21] : memref<12x256xf32, #tpu.memory_space<vmem>>, vector<12x256xf32>
    tpu.vector_store %arg5[%c0_20, %c0_21], %31 {strides = array<i32>} : memref<12x256xf32, #tpu.memory_space<vmem>>, vector<12x256xf32>,
    %c1_22 = arith.constant 1 : index
    %c0_23 = arith.constant 0 : index
    %33 = vector.load %arg1[%c1_22, %c0_23] : memref<25x256xf32, #tpu.memory_space<vmem>>, vector<1x256xf32>
    %c0_24 = arith.constant 0 : index
    %c0_25 = arith.constant 0 : index
    %34 = vector.load %arg5[%c0_24, %c0_25] : memref<12x256xf32, #tpu.memory_space<vmem>>, vector<8x256xf32>
    %35 = vector.broadcast %33 : vector<1x256xf32> to vector<8x256xf32>
    %36 = arith.mulf %35, %34 : vector<8x256xf32>
    %37 = arith.addf %29, %36 : vector<8x256xf32>
    %c6 = arith.constant 6 : index
    %c0_26 = arith.constant 0 : index
    %38 = vector.load %arg1[%c6, %c0_26] : memref<25x256xf32, #tpu.memory_space<vmem>>, vector<1x256xf32>
    %c1_27 = arith.constant 1 : index
    %c0_28 = arith.constant 0 : index
    %39 = vector.load %arg5[%c1_27, %c0_28] : memref<12x256xf32, #tpu.memory_space<vmem>>, vector<8x256xf32>
    %40 = vector.broadcast %38 : vector<1x256xf32> to vector<8x256xf32>
    %41 = arith.mulf %40, %39 : vector<8x256xf32>
    %42 = arith.addf %37, %41 : vector<8x256xf32>
    %c11 = arith.constant 11 : index
    %c0_29 = arith.constant 0 : index
    %43 = vector.load %arg1[%c11, %c0_29] : memref<25x256xf32, #tpu.memory_space<vmem>>, vector<1x256xf32>
    %c2_30 = arith.constant 2 : index
    %c0_31 = arith.constant 0 : index
    %44 = vector.load %arg5[%c2_30, %c0_31] : memref<12x256xf32, #tpu.memory_space<vmem>>, vector<8x256xf32>
    %45 = vector.broadcast %43 : vector<1x256xf32> to vector<8x256xf32>
    %46 = arith.mulf %45, %44 : vector<8x256xf32>
    %47 = arith.addf %42, %46 : vector<8x256xf32>
    %c16 = arith.constant 16 : index
    %c0_32 = arith.constant 0 : index
    %48 = vector.load %arg1[%c16, %c0_32] : memref<25x256xf32, #tpu.memory_space<vmem>>, vector<1x256xf32>
    %c3_33 = arith.constant 3 : index
    %c0_34 = arith.constant 0 : index
    %49 = vector.load %arg5[%c3_33, %c0_34] : memref<12x256xf32, #tpu.memory_space<vmem>>, vector<8x256xf32>
    %50 = vector.broadcast %48 : vector<1x256xf32> to vector<8x256xf32>
    %51 = arith.mulf %50, %49 : vector<8x256xf32>
    %52 = arith.addf %47, %51 : vector<8x256xf32>
    %c21 = arith.constant 21 : index
    %c0_35 = arith.constant 0 : index
    %53 = vector.load %arg1[%c21, %c0_35] : memref<25x256xf32, #tpu.memory_space<vmem>>, vector<1x256xf32>
    %c4_36 = arith.constant 4 : index
    %c0_37 = arith.constant 0 : index
    %54 = vector.load %arg5[%c4_36, %c0_37] : memref<12x256xf32, #tpu.memory_space<vmem>>, vector<8x256xf32>
    %55 = vector.broadcast %53 : vector<1x256xf32> to vector<8x256xf32>
    %56 = arith.mulf %55, %54 : vector<8x256xf32>
    %57 = arith.addf %52, %56 : vector<8x256xf32>
    %c0_38 = arith.constant 0 : index
    %c0_39 = arith.constant 0 : index
    %c2_40 = arith.constant 2 : index
    %58 = vector.load %arg3[%c0_38, %c0_39, %c2_40] : memref<1x12x260xf32, #tpu.memory_space<vmem>>, vector<1x12x256xf32>
    %59 = vector.shape_cast %58 : vector<1x12x256xf32> to vector<12x256xf32>
    %c0_41 = arith.constant 0 : index
    %c0_42 = arith.constant 0 : index
    %60 = vector.load %arg5[%c0_41, %c0_42] : memref<12x256xf32, #tpu.memory_space<vmem>>, vector<12x256xf32>
    tpu.vector_store %arg5[%c0_41, %c0_42], %59 {strides = array<i32>} : memref<12x256xf32, #tpu.memory_space<vmem>>, vector<12x256xf32>,
    %c2_43 = arith.constant 2 : index
    %c0_44 = arith.constant 0 : index
    %61 = vector.load %arg1[%c2_43, %c0_44] : memref<25x256xf32, #tpu.memory_space<vmem>>, vector<1x256xf32>
    %c0_45 = arith.constant 0 : index
    %c0_46 = arith.constant 0 : index
    %62 = vector.load %arg5[%c0_45, %c0_46] : memref<12x256xf32, #tpu.memory_space<vmem>>, vector<8x256xf32>
    %63 = vector.broadcast %61 : vector<1x256xf32> to vector<8x256xf32>
    %64 = arith.mulf %63, %62 : vector<8x256xf32>
    %65 = arith.addf %57, %64 : vector<8x256xf32>
    %c7 = arith.constant 7 : index
    %c0_47 = arith.constant 0 : index
    %66 = vector.load %arg1[%c7, %c0_47] : memref<25x256xf32, #tpu.memory_space<vmem>>, vector<1x256xf32>
    %c1_48 = arith.constant 1 : index
    %c0_49 = arith.constant 0 : index
    %67 = vector.load %arg5[%c1_48, %c0_49] : memref<12x256xf32, #tpu.memory_space<vmem>>, vector<8x256xf32>
    %68 = vector.broadcast %66 : vector<1x256xf32> to vector<8x256xf32>
    %69 = arith.mulf %68, %67 : vector<8x256xf32>
    %70 = arith.addf %65, %69 : vector<8x256xf32>
    %c12 = arith.constant 12 : index
    %c0_50 = arith.constant 0 : index
    %71 = vector.load %arg1[%c12, %c0_50] : memref<25x256xf32, #tpu.memory_space<vmem>>, vector<1x256xf32>
    %c2_51 = arith.constant 2 : index
    %c0_52 = arith.constant 0 : index
    %72 = vector.load %arg5[%c2_51, %c0_52] : memref<12x256xf32, #tpu.memory_space<vmem>>, vector<8x256xf32>
    %73 = vector.broadcast %71 : vector<1x256xf32> to vector<8x256xf32>
    %74 = arith.mulf %73, %72 : vector<8x256xf32>
    %75 = arith.addf %70, %74 : vector<8x256xf32>
    %c17 = arith.constant 17 : index
    %c0_53 = arith.constant 0 : index
    %76 = vector.load %arg1[%c17, %c0_53] : memref<25x256xf32, #tpu.memory_space<vmem>>, vector<1x256xf32>
    %c3_54 = arith.constant 3 : index
    %c0_55 = arith.constant 0 : index
    %77 = vector.load %arg5[%c3_54, %c0_55] : memref<12x256xf32, #tpu.memory_space<vmem>>, vector<8x256xf32>
    %78 = vector.broadcast %76 : vector<1x256xf32> to vector<8x256xf32>
    %79 = arith.mulf %78, %77 : vector<8x256xf32>
    %80 = arith.addf %75, %79 : vector<8x256xf32>
    %c22 = arith.constant 22 : index
    %c0_56 = arith.constant 0 : index
    %81 = vector.load %arg1[%c22, %c0_56] : memref<25x256xf32, #tpu.memory_space<vmem>>, vector<1x256xf32>
    %c4_57 = arith.constant 4 : index
    %c0_58 = arith.constant 0 : index
    %82 = vector.load %arg5[%c4_57, %c0_58] : memref<12x256xf32, #tpu.memory_space<vmem>>, vector<8x256xf32>
    %83 = vector.broadcast %81 : vector<1x256xf32> to vector<8x256xf32>
    %84 = arith.mulf %83, %82 : vector<8x256xf32>
    %85 = arith.addf %80, %84 : vector<8x256xf32>
    %c0_59 = arith.constant 0 : index
    %c0_60 = arith.constant 0 : index
    %c3_61 = arith.constant 3 : index
    %86 = vector.load %arg3[%c0_59, %c0_60, %c3_61] : memref<1x12x260xf32, #tpu.memory_space<vmem>>, vector<1x12x256xf32>
    %87 = vector.shape_cast %86 : vector<1x12x256xf32> to vector<12x256xf32>
    %c0_62 = arith.constant 0 : index
    %c0_63 = arith.constant 0 : index
    %88 = vector.load %arg5[%c0_62, %c0_63] : memref<12x256xf32, #tpu.memory_space<vmem>>, vector<12x256xf32>
    tpu.vector_store %arg5[%c0_62, %c0_63], %87 {strides = array<i32>} : memref<12x256xf32, #tpu.memory_space<vmem>>, vector<12x256xf32>,
    %c3_64 = arith.constant 3 : index
    %c0_65 = arith.constant 0 : index
    %89 = vector.load %arg1[%c3_64, %c0_65] : memref<25x256xf32, #tpu.memory_space<vmem>>, vector<1x256xf32>
    %c0_66 = arith.constant 0 : index
    %c0_67 = arith.constant 0 : index
    %90 = vector.load %arg5[%c0_66, %c0_67] : memref<12x256xf32, #tpu.memory_space<vmem>>, vector<8x256xf32>
    %91 = vector.broadcast %89 : vector<1x256xf32> to vector<8x256xf32>
    %92 = arith.mulf %91, %90 : vector<8x256xf32>
    %93 = arith.addf %85, %92 : vector<8x256xf32>
    %c8 = arith.constant 8 : index
    %c0_68 = arith.constant 0 : index
    %94 = vector.load %arg1[%c8, %c0_68] : memref<25x256xf32, #tpu.memory_space<vmem>>, vector<1x256xf32>
    %c1_69 = arith.constant 1 : index
    %c0_70 = arith.constant 0 : index
    %95 = vector.load %arg5[%c1_69, %c0_70] : memref<12x256xf32, #tpu.memory_space<vmem>>, vector<8x256xf32>
    %96 = vector.broadcast %94 : vector<1x256xf32> to vector<8x256xf32>
    %97 = arith.mulf %96, %95 : vector<8x256xf32>
    %98 = arith.addf %93, %97 : vector<8x256xf32>
    %c13 = arith.constant 13 : index
    %c0_71 = arith.constant 0 : index
    %99 = vector.load %arg1[%c13, %c0_71] : memref<25x256xf32, #tpu.memory_space<vmem>>, vector<1x256xf32>
    %c2_72 = arith.constant 2 : index
    %c0_73 = arith.constant 0 : index
    %100 = vector.load %arg5[%c2_72, %c0_73] : memref<12x256xf32, #tpu.memory_space<vmem>>, vector<8x256xf32>
    %101 = vector.broadcast %99 : vector<1x256xf32> to vector<8x256xf32>
    %102 = arith.mulf %101, %100 : vector<8x256xf32>
    %103 = arith.addf %98, %102 : vector<8x256xf32>
    %c18 = arith.constant 18 : index
    %c0_74 = arith.constant 0 : index
    %104 = vector.load %arg1[%c18, %c0_74] : memref<25x256xf32, #tpu.memory_space<vmem>>, vector<1x256xf32>
    %c3_75 = arith.constant 3 : index
    %c0_76 = arith.constant 0 : index
    %105 = vector.load %arg5[%c3_75, %c0_76] : memref<12x256xf32, #tpu.memory_space<vmem>>, vector<8x256xf32>
    %106 = vector.broadcast %104 : vector<1x256xf32> to vector<8x256xf32>
    %107 = arith.mulf %106, %105 : vector<8x256xf32>
    %108 = arith.addf %103, %107 : vector<8x256xf32>
    %c23 = arith.constant 23 : index
    %c0_77 = arith.constant 0 : index
    %109 = vector.load %arg1[%c23, %c0_77] : memref<25x256xf32, #tpu.memory_space<vmem>>, vector<1x256xf32>
    %c4_78 = arith.constant 4 : index
    %c0_79 = arith.constant 0 : index
    %110 = vector.load %arg5[%c4_78, %c0_79] : memref<12x256xf32, #tpu.memory_space<vmem>>, vector<8x256xf32>
    %111 = vector.broadcast %109 : vector<1x256xf32> to vector<8x256xf32>
    %112 = arith.mulf %111, %110 : vector<8x256xf32>
    %113 = arith.addf %108, %112 : vector<8x256xf32>
    %c0_80 = arith.constant 0 : index
    %c0_81 = arith.constant 0 : index
    %c4_82 = arith.constant 4 : index
    %114 = vector.load %arg3[%c0_80, %c0_81, %c4_82] : memref<1x12x260xf32, #tpu.memory_space<vmem>>, vector<1x12x256xf32>
    %115 = vector.shape_cast %114 : vector<1x12x256xf32> to vector<12x256xf32>
    %c0_83 = arith.constant 0 : index
    %c0_84 = arith.constant 0 : index
    %116 = vector.load %arg5[%c0_83, %c0_84] : memref<12x256xf32, #tpu.memory_space<vmem>>, vector<12x256xf32>
    tpu.vector_store %arg5[%c0_83, %c0_84], %115 {strides = array<i32>} : memref<12x256xf32, #tpu.memory_space<vmem>>, vector<12x256xf32>,
    %c4_85 = arith.constant 4 : index
    %c0_86 = arith.constant 0 : index
    %117 = vector.load %arg1[%c4_85, %c0_86] : memref<25x256xf32, #tpu.memory_space<vmem>>, vector<1x256xf32>
    %c0_87 = arith.constant 0 : index
    %c0_88 = arith.constant 0 : index
    %118 = vector.load %arg5[%c0_87, %c0_88] : memref<12x256xf32, #tpu.memory_space<vmem>>, vector<8x256xf32>
    %119 = vector.broadcast %117 : vector<1x256xf32> to vector<8x256xf32>
    %120 = arith.mulf %119, %118 : vector<8x256xf32>
    %121 = arith.addf %113, %120 : vector<8x256xf32>
    %c9 = arith.constant 9 : index
    %c0_89 = arith.constant 0 : index
    %122 = vector.load %arg1[%c9, %c0_89] : memref<25x256xf32, #tpu.memory_space<vmem>>, vector<1x256xf32>
    %c1_90 = arith.constant 1 : index
    %c0_91 = arith.constant 0 : index
    %123 = vector.load %arg5[%c1_90, %c0_91] : memref<12x256xf32, #tpu.memory_space<vmem>>, vector<8x256xf32>
    %124 = vector.broadcast %122 : vector<1x256xf32> to vector<8x256xf32>
    %125 = arith.mulf %124, %123 : vector<8x256xf32>
    %126 = arith.addf %121, %125 : vector<8x256xf32>
    %c14 = arith.constant 14 : index
    %c0_92 = arith.constant 0 : index
    %127 = vector.load %arg1[%c14, %c0_92] : memref<25x256xf32, #tpu.memory_space<vmem>>, vector<1x256xf32>
    %c2_93 = arith.constant 2 : index
    %c0_94 = arith.constant 0 : index
    %128 = vector.load %arg5[%c2_93, %c0_94] : memref<12x256xf32, #tpu.memory_space<vmem>>, vector<8x256xf32>
    %129 = vector.broadcast %127 : vector<1x256xf32> to vector<8x256xf32>
    %130 = arith.mulf %129, %128 : vector<8x256xf32>
    %131 = arith.addf %126, %130 : vector<8x256xf32>
    %c19 = arith.constant 19 : index
    %c0_95 = arith.constant 0 : index
    %132 = vector.load %arg1[%c19, %c0_95] : memref<25x256xf32, #tpu.memory_space<vmem>>, vector<1x256xf32>
    %c3_96 = arith.constant 3 : index
    %c0_97 = arith.constant 0 : index
    %133 = vector.load %arg5[%c3_96, %c0_97] : memref<12x256xf32, #tpu.memory_space<vmem>>, vector<8x256xf32>
    %134 = vector.broadcast %132 : vector<1x256xf32> to vector<8x256xf32>
    %135 = arith.mulf %134, %133 : vector<8x256xf32>
    %136 = arith.addf %131, %135 : vector<8x256xf32>
    %c24 = arith.constant 24 : index
    %c0_98 = arith.constant 0 : index
    %137 = vector.load %arg1[%c24, %c0_98] : memref<25x256xf32, #tpu.memory_space<vmem>>, vector<1x256xf32>
    %c4_99 = arith.constant 4 : index
    %c0_100 = arith.constant 0 : index
    %138 = vector.load %arg5[%c4_99, %c0_100] : memref<12x256xf32, #tpu.memory_space<vmem>>, vector<8x256xf32>
    %139 = vector.broadcast %137 : vector<1x256xf32> to vector<8x256xf32>
    %140 = arith.mulf %139, %138 : vector<8x256xf32>
    %141 = arith.addf %136, %140 : vector<8x256xf32>
    %c0_101 = arith.constant 0 : index
    %c0_102 = arith.constant 0 : index
    %c0_103 = arith.constant 0 : index
    %142 = vector.load %arg4[%c0_101, %c0_102, %c0_103] : memref<1x8x256xf32, #tpu.memory_space<vmem>>, vector<1x8x256xf32>
    %143 = vector.shape_cast %142 : vector<1x8x256xf32> to vector<8x256xf32>
    %144 = vector.shape_cast %141 : vector<8x256xf32> to vector<1x8x256xf32>
    tpu.vector_store %arg4[%c0_101, %c0_102, %c0_103], %144 {strides = array<i32>} : memref<1x8x256xf32, #tpu.memory_space<vmem>>, vector<1x8x256xf32>,
    return
  }
  func.func @transform_0(%arg0: i32) -> (i32, i32) {
    %c0_i32 = arith.constant 0 : i32
    %c0_i32_0 = arith.constant 0 : i32
    %c0_i32_1 = arith.constant 0 : i32
    return %c0_i32, %c0_i32_0 : i32, i32
  }
  func.func @transform_1(%arg0: i32) -> i32 {
    %c0_i32 = arith.constant 0 : i32
    %c0_i32_0 = arith.constant 0 : i32
    return %c0_i32 : i32
  }
  func.func @transform_2(%arg0: i32) -> (i32, i32, i32) {
    %c0_i32 = arith.constant 0 : i32
    %c0_i32_0 = arith.constant 0 : i32
    %c0_i32_1 = arith.constant 0 : i32
    return %arg0, %c0_i32, %c0_i32_0 : i32, i32, i32
  }
  func.func @transform_3(%arg0: i32) -> (i32, i32, i32) {
    %c0_i32 = arith.constant 0 : i32
    %c0_i32_0 = arith.constant 0 : i32
    %c0_i32_1 = arith.constant 0 : i32
    return %arg0, %c0_i32, %c0_i32_0 : i32, i32, i32
  }
}

</mosaic_0001>

<bundles_post_ra>
// kernel: tpu_custom_call.1
= control target key start
LH: loop header
LB: loop body
LE: loop exit
PB: predicated region body
PF: predicated region fallthrough
CT: control target
= control target key end

     0   :  { %s2061_s0 = inlined_call_operand.hbm [shape: f32[25,256], index: 0, kind: input, shape index: {}]   ;;  %s2062_s1 = inlined_call_operand.<no memory space> [shape: f32[1], index: 1, kind: input, shape index: {}]   ;;  %s2063_s2 = inlined_call_operand.hbm [shape: f32[2,12,260], index: 2, kind: input, shape index: {}]   ;;  %s2064_s3 = inlined_call_operand.hbm [shape: f32[2,8,256], index: 3, kind: output, shape index: {}]  }
   0x1   :  { %8 = sst [smem:[#allocation3]] %s2062_s1 }
   0x2   :  { %9 = vsyncpa [#allocation5], 0 }
   0x3   :  { %10 = vsyncpa [#allocation8], 0 }
   0x4   :  { %12 = vsyncpa [#allocation8 + $0x1], 0 }
   0x5   :  { %13 = vsyncpa [#allocation6], 0 }
   0x6   :  { %15 = vsyncpa [#allocation6 + $0x1], 0  ;;  %s1506_s14 = smov 0   ;;  %s1508_s15 = smov 0  }
   0x7   :  { %s1510_s16 = smov 0   ;;  %s1512_s17 = smov 0  }
   0x8 LB: > { %s1527_s1 = sadd.s32 4294967295, %s1470_s17   ;;  %s1260_s18 = sadd.s32 4294967294, %s1470_s17   ;;  %s1470_s17 = sphi %s1512_s17, %s2098_s17   ;;  %s1466_s16 = sphi %s1510_s16, %s2097_s16   ;;  %s1462_s15 = sphi %s1508_s15, %s2096_s15   ;;  %s1458_s14 = sphi %s1506_s14, %s2095_s14  }
   0x9   : > { %p83_p0 = scmp.ne.s32.totalorder %s1462_s15, %s1458_s14  ;;  %p2065_p1 = scmp.eq.s32.totalorder %s1527_s1, 0 }
   0xa   : > { %p113_p3 = scmp.eq.s32.totalorder %s1260_s18, 1  ;;  %p1261_p5 = scmp.ge.s32.totalorder %s1470_s17, 1 }
   0xb   : > { %p1536_p4 = por %p2065_p1, %p83_p0  ;;  %p120_p7 = scmp.lt.s32.totalorder %s1470_s17, 3 }
   0xc   : > { %p1541_p6 = por %p113_p3, %p83_p0  ;;  %s1472_s22 = smov [#allocation4]  }
   0xd   : > { %s2071_s19 = scalar_select %p1536_p4, 1, 0 }
   0xe   : > { %s2072_s20 = scalar_select %p1541_p6, 1, 0 }
   0xf   : > { %p1546_p8 = pnand %p1261_p5, %p120_p7  ;;  %s132_s23 = sshll.u32 %s1472_s22, 4  ;;  %s1550_s23 = int_to_ptr.vmem [resolvable:$true] %s132_s23 }
  0x10   : > { %s1562_s25 = sadd.s32 1, %s1470_s17   ;;  %s70_s26 = sadd.s32 1, %s1466_s16 }
  0x11   : > { %s2073_s21 = scalar_select %p1546_p8, 1, 0 }
  0x12   : > { %p1285_p9 = pneg %p1546_p8  ;;  %s67_s27 = ssub.s32 %s1470_s17, %s1562_s25 }
  0x13   : > { %s1342_s30 = scalar_lea.hbm %s2061_s0, 1024 }
  0x14   : > { %p1557_p11 = pnand %p1285_p9, %p2065_p1  ;;  %p1343_p12 = scmp.ne.s32.totalorder %s2061_s0, %s1342_s30 }
  0x15   : > { %p1349_p5 = scmp.lt.u32.totalorder %s1342_s30, %s2061_s0 }
  0x16   : > { %p1344_p13 = pneg %p1557_p11 }
  0x18   : > { %p1345_p0 = pnand %p1344_p13, %p1343_p12 }
  0x1a   : > { %p1346_p3 = pneg %p1345_p0 }
  0x1c   : > { %p1351_p7 = pnand %p1349_p5, %p1346_p3 }
  0x1e   : > { %1354 = shalt.err (!%p1351_p7)
}
  0x1f   : > { %s1355_s8 = scalar_lea.vmem %s1550_s23, 1024  ;;  %p1363_p2 = scmp.lt.s32.totalorder %s1550_s23, %s1550_s23 }
  0x20   : > { %p1356_p9 = scmp.ne.s32.totalorder %s1550_s23, %s1355_s8  ;;  %p1364_p6 = scmp.lt.s32.totalorder %s1355_s8, %s1355_s8 }
  0x22   : > { %p1358_p10 = pnand %p1356_p9, %p1344_p13  ;;  %p1365_p4 = por %p1364_p6, %p1363_p2 }
  0x24   : > { %p1359_p1 = pneg %p1358_p10 }
  0x26   : > { %p1366_p8 = pnand %p1365_p4, %p1359_p1 }
  0x28   : > { %1369 = shalt.err (!%p1366_p8)
}
  0x29   : > { %s1473_s9 = smov 256   ;;  %s1474_s10 = smov 16  }
  0x2a   : > { %1288 = dma.hbm_to_vmem [thread:$0]  (!%p1557_p11), %s2061_s0, 1024, %s1550_s23, [#allocation5], %s1473_s9, %s1473_s9, %s1474_s10  }
  0x2b   : > { %p68_p2 = scmp.eq.s32.totalorder %s67_s27, 0  ;;  %p77_p1 = scmp.ne.s32.totalorder %s1466_s16, %s1462_s15 }
  0x2c   : > { %p78_p4 = scmp.eq.s32.totalorder %s1470_s17, 0  ;;  %p1298_p6 = scmp.lt.s32.totalorder %s1470_s17, 2 }
  0x2d   : > { %s1593_s13 = scalar_select %p68_p2, %s1466_s16, %s70_s26  }
  0x2e   : > { %p79_p8 = por %p78_p4, %p77_p1  ;;  %p2075_p10 = scmp.eq.s32.totalorder %s1527_s1, 1 }
  0x2f   : > { %s149_s22 = sand.u32 1, %s1466_s16   ;;  %s1275_s28 = smul.u32 768, %s1470_s17 }
  0x30   : > { %p1597_p12 = por %p2075_p10, %p77_p1  ;;  %s1274_s29 = smul.u32 48, %s149_s22 }
  0x31   : > { %s1606_s4 = scalar_lea.hbm %s2063_s2, %s1275_s28  ;;  %p1608_p11 = pnand %p1298_p6, %p79_p8 }
  0x32   : > { %s153_s26 = scalar_lea.vmem [#allocation7], %s1274_s29  ;;  %s1614_s5 = scalar_lea.sflag [#allocation8], %s149_s22 }
  0x33   : > { %s160_s27 = sshll.u32 %s153_s26, 4  ;;  %s1370_s6 = scalar_lea.hbm %s1606_s4, 768  ;;  %s1612_s27 = int_to_ptr.vmem [resolvable:$true] %s160_s27 }
  0x34   : > { %p1371_p13 = scmp.ne.s32.totalorder %s1606_s4, %s1370_s6  ;;  %p1372_p0 = pneg %p1608_p11 }
  0x35   : > { %s1375_s9 = scalar_lea.hbm %s2063_s2, 1536  ;;  %p1376_p7 = scmp.lt.u32.totalorder %s1606_s4, %s2063_s2 }
  0x36   : > { %p1373_p3 = pnand %p1372_p0, %p1371_p13  ;;  %p1377_p9 = scmp.lt.u32.totalorder %s1375_s9, %s1370_s6 }
  0x37   : > { %p1379_p1 = scmp.lt.u32.totalorder %s1370_s6, %s1606_s4 }
  0x38   : > { %p1374_p5 = pneg %p1373_p3  ;;  %p1378_p2 = por %p1377_p9, %p1376_p7 }
  0x3a   : > { %p1380_p4 = por %p1379_p1, %p1378_p2 }
  0x3c   : > { %p1381_p6 = pnand %p1380_p4, %p1374_p5 }
  0x3e   : > { %1384 = shalt.err (!%p1381_p6)
}
  0x3f   : > { %s1385_s12 = scalar_lea.vmem %s1612_s27, 768  ;;  %s1475_s22 = smov [#allocation7]  }
  0x40   : > { %p1386_p8 = scmp.ne.s32.totalorder %s1612_s27, %s1385_s12  ;;  %s1390_s28 = sshll.u32 %s1475_s22, 4  ;;  %s1391_s28 = int_to_ptr.vmem [resolvable:$false] %s1390_s28 }
  0x41   : > { %s1392_s29 = scalar_lea.vmem %s1391_s28, 1536  ;;  %p1393_p3 = scmp.lt.s32.totalorder %s1612_s27, %s1391_s28 }
  0x42   : > { %p1388_p10 = pnand %p1386_p8, %p1372_p0  ;;  %p1394_p7 = scmp.lt.s32.totalorder %s1392_s29, %s1385_s12 }
  0x44   : > { %p1389_p13 = pneg %p1388_p10  ;;  %p1395_p9 = por %p1394_p7, %p1393_p3 }
  0x46   : > { %p1396_p2 = pnand %p1395_p9, %p1389_p13 }
  0x48   : > { %1399 = shalt.err (!%p1396_p2)
}
  0x49   : > { %s1476_s24 = smov 384   ;;  %s1477_s30 = smov 24  }
  0x4a   : > { %1292 = dma.hbm_to_vmem [thread:$0]  (!%p1608_p11), %s1606_s4, 768, %s1612_s27, %s1614_s5, %s1476_s24, %s1476_s24, %s1477_s30  }
  0x4b   : > { %p2078_p0 = scmp.ne.s32.totalorder %s2073_s21, 0 }
  0x4d   : > { %172 = sbr.rel (%p2078_p0) target bundleno = 295 (0x127), region = 32 }
  0x54   : > { %p2079_p5 = scmp.eq.s32.totalorder %s1527_s1, 0 }
  0x56   : > { %1445 = dma.done.wait (%p2079_p5), [#allocation5], 1024   ;;  %p2080_p1 = pmov %p2079_p5 }
  0x57   : > { %s1649_s26 = sand.u32 1, %s1462_s15   ;;  %p2081_p11 = scmp.ne.s32.totalorder %s2071_s19, 0 }
  0x58   : > { %1447 = vsyncadd (%p2080_p1), [#allocation5], 4294966272  ;;  %s1276_s6 = smul.u32 48, %s1649_s26  ;;  %s179_s7 = scalar_lea.sflag [#allocation8], %s1649_s26 }
  0x5a   : > { %s1653_s8 = scalar_lea.vmem [#allocation7], %s1276_s6 }
  0x5b   : > { %1449 = dma.done.wait (%p2081_p11), %s179_s7, 768  }
  0x5c   : > { %1451 = vsyncadd (%p2081_p11), %s179_s7, 4294966528  ;;  %v379_v0 = vld [vmem:[%s1653_s8 + $0x10] sm:$0xff]  ;;  %v1661_v1 = vld [vmem:[%s1653_s8] sm:$0xff]  ;;  %s1478_s21 = smov 127   ;;  %s1479_s19 = smov 126   ;;  %v219_v17 = vlaneseq  ;;  %vm258_vm0 = vcmask 1046528  }
  0x5d   : > { %393 = vrot.lane.b32.xlu1 %v379_v0, %s1478_s21  ;;  %389 = vrot.lane.b32.xlu0 %v1661_v1, %s1478_s21  ;;  %v1665_v2 = vld [vmem:[%s1653_s8 + $0x8] sm:$0xff]  ;;  %211 = vst [vmem:[#allocation2] sm:$0xff] %v1661_v1  ;;  %v380_v3 = vld [vmem:[%s1653_s8 + $0x18] sm:$0xf]  ;;  %s1480_s4 = smov 125   ;;  %s1481_s23 = smov 124  }
  0x5e   : > { %212 = vst [vmem:[#allocation2 + $0x8] sm:$0xff] %v1665_v2  ;;  %v382_v4 = vld [vmem:[%s1653_s8 + $0x28] sm:$0xf]  ;;  %v381_v5 = vld [vmem:[%s1653_s8 + $0x20] sm:$0xf]  ;;  %v220_v18 = vshrl.u32 %v219_v17, 7 }
  0x5f   : > { %v209_v6 = vld [vmem:[%s1653_s8 + $0x18] sm:$0xf]  ;;  %v210_v7 = vld [vmem:[%s1653_s8 + $0x20] sm:$0xf]  ;;  %v578_v9 = vld [vmem:[%s1653_s8 + $0x28] sm:$0xf] }
  0x60   : > { %213 = vst [vmem:[#allocation2 + $0x10] sm:$0xf] %v209_v6  ;;  %214 = vst [vmem:[#allocation2 + $0x18] sm:$0xf] %v210_v7  ;;  %v576_v8 = vld [vmem:[%s1653_s8 + $0x18] sm:$0xf] }
  0x61   : > { %395 = vrot.lane.b32.xlu1 %v380_v3, %s1478_s21  ;;  %391 = vrot.lane.b32.xlu0 %v1665_v2, %s1478_s21  ;;  %v577_v10 = vld [vmem:[%s1653_s8 + $0x20] sm:$0xf]  ;;  %v772_v11 = vld [vmem:[%s1653_s8 + $0x18] sm:$0xf]  ;;  %v1690_v19 = vsub.s32 0, %v220_v18  ;;  %v1692_v21 = vsub.s32 1, %v220_v18 }
  0x62   : > { %v774_v12 = vld [vmem:[%s1653_s8 + $0x28] sm:$0xf]  ;;  %v773_v13 = vld [vmem:[%s1653_s8 + $0x20] sm:$0xf]  ;;  %v968_v14 = vld [vmem:[%s1653_s8 + $0x18] sm:$0xf] }
  0x63   : > { %v970_v15 = vld [vmem:[%s1653_s8 + $0x28] sm:$0xf]  ;;  %v969_v16 = vld [vmem:[%s1653_s8 + $0x20] sm:$0xf]  ;;  %s1694_s27 = sld [smem:[#allocation3]]  ;;  %vm294_vm1 = vcmask 1045504  }
  0x64   : > { %v234_v20 = vld [vmem:[#allocation4 + $0x5] ss:$8 sm:$0x3]  ;;  %v215_v22 = vld [vmem:[#allocation4] ss:$8 sm:$0x3] }
  0x65   : > { %399 = vrot.lane.b32.xlu1 %v382_v4, %s1478_s21  ;;  %397 = vrot.lane.b32.xlu0 %v381_v5, %s1478_s21  ;;  %v235_v23 = vld [vmem:[#allocation2] sm:$0xfe]  ;;  %v243_v24 = vrot.slane %v234_v20, %v1690_v19  ;;  %v270_v26 = vld [vmem:[#allocation4 + $0x12] ss:$8 sm:$0x3]  ;;  %v222_v27 = vrot.slane %v215_v22, %v1690_v19  ;;  %v247_v29 = vrot.slane %v234_v20, %v1692_v21  ;;  %vm330_vm2 = vcmask 1044480  }
  0x66   : > { %v236_v28 = vld [vmem:[#allocation2 + $0x8] sm:$0xfe]  ;;  %v279_v33 = vrot.slane %v270_v26, %v1690_v19  ;;  %v306_v34 = vld [vmem:[#allocation4 + $0x17] ss:$8 sm:$0x3]  ;;  %v226_v35 = vrot.slane %v215_v22, %v1692_v21  ;;  %v283_v39 = vrot.slane %v270_v26, %v1692_v21  ;;  %vm366_vm3 = vcmask 1043456  }
  0x67   : > { %v237_v25 = vld [vmem:[#allocation2 + $0x10] sm:$0x1]  ;;  %v238_v30 = vld [vmem:[#allocation2 + $0x18] sm:$0x1]  ;;  %v250_v31 = vmul.f32 %v243_v24, %v235_v23  ;;  %v271_v36 = vld [vmem:[#allocation2] sm:$0xfc]  ;;  %v229_v38 = vmul.f32 %v1661_v1, %v222_v27  ;;  %v251_v42 = vmul.f32 %v247_v29, %v236_v28  ;;  %v315_v44 = vrot.slane %v306_v34, %v1690_v19 }
  0x68   : > { %v252_v32 = vmul.f32 %v243_v24, %v237_v25  ;;  %v273_v37 = vld [vmem:[#allocation2 + $0x10] sm:$0x3]  ;;  %v272_v41 = vld [vmem:[#allocation2 + $0x8] sm:$0xfc]  ;;  %v253_v43 = vmul.f32 %v247_v29, %v238_v30  ;;  %v307_v46 = vld [vmem:[#allocation2] sm:$0xf8]  ;;  %v286_v50 = vmul.f32 %v279_v33, %v271_v36  ;;  %v230_v52 = vmul.f32 %v1665_v2, %v226_v35 }
  0x69   : > { %587 = vrot.lane.b32.xlu1 %v1665_v2, %s1479_s19  ;;  %585 = vrot.lane.b32.xlu0 %v1661_v1, %s1479_s19  ;;  %v206_v40 = vstv %s1694_s27  ;;  %v342_v45 = vld [vmem:[#allocation4 + $0x24] ss:$8 sm:$0x3]  ;;  %v259_v47 = vrot.slane %v250_v31, 1  ;;  %v274_v49 = vld [vmem:[#allocation2 + $0x18] sm:$0x3]  ;;  %v288_v51 = vmul.f32 %v279_v33, %v273_v37  ;;  %v287_v55 = vmul.f32 %v283_v39, %v272_v41 }
  0x6a   : > { %v260_v48 = vrot.slane %v252_v32, 1  ;;  %v309_v53 = vld [vmem:[#allocation2 + $0x10] sm:$0x7]  ;;  %v231_v54 = vadd.f32 %v229_v38, %v206_v40  ;;  %v319_v56 = vrot.slane %v306_v34, %v1692_v21  ;;  %v351_v57 = vrot.slane %v342_v45, %v1690_v19  ;;  %v308_v58 = vld [vmem:[#allocation2 + $0x8] sm:$0xf8]  ;;  %s1267_s5 = sshll.u32 %s1649_s26, 4 }
  0x6b   : > { %v343_v59 = vld [vmem:[#allocation2] sm:$0xf0]  ;;  %v262_v60 = vrot.slane %v251_v42, 1  ;;  %v263_v61 = vrot.slane %v253_v43, 1  ;;  %v289_v62 = vmul.f32 %v283_v39, %v274_v49  ;;  %v322_v63 = vmul.f32 %v315_v44, %v307_v46  ;;  %v310_v4 = vld [vmem:[#allocation2 + $0x18] sm:$0x7] }
  0x6c   : > { %v296_v3 = vrot.slane %v288_v51, 2  ;;  %v345_v5 = vld [vmem:[#allocation2 + $0x10] sm:$0xf]  ;;  %v355_v6 = vrot.slane %v342_v45, %v1692_v21  ;;  %v232_v7 = vadd.f32 %v230_v52, %v206_v40  ;;  %v1712_v26 = vld [vmem:[#allocation4 + $0x1] ss:$8 sm:$0x3] }
  0x6d   : > { %591 = vrot.lane.b32.xlu1 %v576_v8, %s1479_s19  ;;  %589 = vrot.lane.b32.xlu0 %v379_v0, %s1479_s19  ;;  %v344_v8 = vld [vmem:[#allocation2 + $0x8] sm:$0xf0]  ;;  %v331_v18 = vrot.slane %v322_v63, 3  ;;  %v360_v22 = vmul.f32 %v351_v57, %v345_v5  ;;  %v469_v35 = vld [vmem:[#allocation4 + $0x13] ss:$8 sm:$0x3]  ;;  %v422_v42 = vrot.slane %v1712_v26, %v1690_v19  ;;  %v426_v43 = vrot.slane %v1712_v26, %v1692_v21 }
  0x6e   : > { %v359_v23 = vmul.f32 %v355_v6, %v344_v8  ;;  %v434_v31 = vld [vmem:[#allocation4 + $0x6] ss:$8 sm:$0x3]  ;;  %vm401_vm4 = vcmask 1039360   ;;  %vm597_vm5 = vcmask 1031168   ;;  %v1734_v52 = vrot.slane %v469_v35, %v1692_v21  ;;  %s1273_s9 = sshll.u32 %s1527_s1, 8 }
  0x6f   : > { %v368_v34 = vrot.slane %v360_v22, 4  ;;  %v504_v40 = vld [vmem:[#allocation4 + $0x20] ss:$8 sm:$0x3]  ;;  %v1727_v49 = vrot.slane %v434_v31, %v1692_v21  ;;  %vm793_vm6 = vcmask 1022976   ;;  %vm989_vm7 = vcmask 1014784   ;;  %s2017_s28 = scalar_lea.hbm %s2064_s3, %s1273_s9 }
  0x70   : > { %v370_v36 = vrot.slane %v359_v23, 4  ;;  %v539_v46 = vld [vmem:[#allocation4 + $0x25] ss:$8 sm:$0x3]  ;;  %s204_s10 = scalar_lea.vmem [#allocation9], %s1267_s5  ;;  %s1164_s1 = scalar_lea.sflag [#allocation6], %s1649_s26 }
  0x71   : > { %595 = vrot.lane.b32.xlu1 %v578_v9, %s1479_s19  ;;  %593 = vrot.lane.b32.xlu0 %v577_v10, %s1479_s19  ;;  %v298_v9 = vrot.slane %v287_v55, 2  ;;  %v323_v10 = vmul.f32 %v319_v56, %v308_v58  ;;  %s1178_s11 = sshll.u32 %s204_s10, 4  ;;  %s1482_s24 = smov [#allocation9]   ;;  %s2019_s11 = int_to_ptr.vmem [resolvable:$true] %s1178_s11 }
  0x72   : > { %s1400_s29 = scalar_lea.vmem %s2019_s11, 256  ;;  %s1404_s30 = sshll.u32 %s1482_s24, 4  ;;  %s1405_s30 = int_to_ptr.vmem [resolvable:$false] %s1404_s30 }
  0x73   : > { %v334_v29 = vrot.slane %v323_v10, 3  ;;  %p1401_p4 = scmp.ne.s32.totalorder %s2019_s11, %s1400_s29  ;;  %s1406_s6 = scalar_lea.vmem %s1405_s30, 512 }
  0x74   : > { %p1407_p10 = scmp.lt.s32.totalorder %s2019_s11, %s1405_s30  ;;  %p1408_p13 = scmp.lt.s32.totalorder %s1406_s6, %s1400_s29 }
  0x75   : > { %783 = vrot.lane.b32.xlu1 %v1665_v2, %s1480_s4  ;;  %781 = vrot.lane.b32.xlu0 %v1661_v1, %s1480_s4  ;;  %p1402_p6 = pnand %p1401_p4, %p1597_p12 }
  0x76   : > { %p1409_p3 = por %p1408_p13, %p1407_p10 }
  0x77   : > { %p1403_p8 = pneg %p1402_p6 }
  0x79   : > { %787 = vrot.lane.b32.xlu1 %v772_v11, %s1480_s4  ;;  %785 = vrot.lane.b32.xlu0 %v379_v0, %s1480_s4  ;;  %v346_v11 = vld [vmem:[#allocation2 + $0x18] sm:$0xf]  ;;  %p1410_p7 = pnand %p1409_p3, %p1403_p8 }
  0x7a   : > { %v361_v24 = vmul.f32 %v355_v6, %v346_v11  ;;  %v1757_v6 = vld [vmem:[#allocation4 + $0x3] ss:$8 sm:$0x3] }
  0x7c   : > { %v371_v37 = vrot.slane %v361_v24, 4 }
  0x7d   : > { %791 = vrot.lane.b32.xlu1 %v774_v12, %s1480_s4  ;;  %789 = vrot.lane.b32.xlu0 %v773_v13, %s1480_s4  ;;  %v358_v12 = vmul.f32 %v351_v57, %v343_v59  ;;  %v264_v13 = vsel %vm258_vm0, %v262_v60, %v263_v61  ;;  %v665_v57 = vld [vmem:[#allocation4 + $0x14] ss:$8 sm:$0x3]  ;;  %v1744_v61 = vrot.slane %v539_v46, %v1690_v19 }
  0x7e   : > { %v268_v25 = vadd.f32 %v264_v13, %v232_v7  ;;  %v372_v55 = vsel %vm366_vm3, %v370_v36, %v371_v37  ;;  %v826_v7 = vld [vmem:[#allocation4 + $0x10] ss:$8 sm:$0x3]  ;;  %v1766_v10 = vrot.slane %v665_v57, %v1690_v19  ;;  %v1769_v11 = vrot.slane %v665_v57, %v1692_v21 }
  0x7f   : > { %v367_v33 = vrot.slane %v358_v12, 4  ;;  %v861_v12 = vld [vmem:[#allocation4 + $0x15] ss:$8 sm:$0x3] }
  0x81   : > { %979 = vrot.lane.b32.xlu1 %v1665_v2, %s1481_s23  ;;  %977 = vrot.lane.b32.xlu0 %v1661_v1, %s1481_s23  ;;  %v295_v1 = vrot.slane %v286_v50, 2  ;;  %v324_v2 = vmul.f32 %v315_v44, %v309_v53  ;;  %v1730_v50 = vrot.slane %v469_v35, %v1690_v19  ;;  %v369_v51 = vsel %vm366_vm3, %v367_v33, %v368_v34  ;;  %v1022_v33 = vld [vmem:[#allocation4 + $0x11] ss:$8 sm:$0x3] }
  0x82   : > { %v1737_v53 = vrot.slane %v504_v40, %v1690_v19  ;;  %v1057_v34 = vld [vmem:[#allocation4 + $0x16] ss:$8 sm:$0x3]  ;;  %v1801_v35 = vrot.slane %v861_v12, %v1692_v21  ;;  %v1826_v57 = vrot.slane %v1022_v33, %v1690_v19 }
  0x83   : > { %v297_v17 = vsel %vm294_vm1, %v295_v1, %v296_v3  ;;  %v332_v20 = vrot.slane %v324_v2, 3  ;;  %v735_v1 = vld [vmem:[#allocation4 + $0x26] ss:$8 sm:$0x3]  ;;  %v1832_v26 = vrot.slane %v1057_v34, %v1690_v19 }
  0x85   : > { %983 = vrot.lane.b32.xlu1 %v968_v14, %s1481_s23  ;;  %981 = vrot.lane.b32.xlu0 %v379_v0, %s1481_s23  ;;  %v261_v0 = vsel %vm258_vm0, %v259_v47, %v260_v48  ;;  %v333_v32 = vsel %vm330_vm2, %v331_v18, %v332_v20  ;;  %v1721_v47 = vld [vmem:[#allocation4 + $0x2] ss:$8 sm:$0x3]  ;;  %v1724_v48 = vrot.slane %v434_v31, %v1690_v19  ;;  %v931_v18 = vld [vmem:[#allocation4 + $0x27] ss:$8 sm:$0x3] }
  0x86   : > { %v267_v14 = vadd.f32 %v261_v0, %v231_v54  ;;  %v1740_v54 = vrot.slane %v504_v40, %v1692_v21  ;;  %v618_v63 = vrot.slane %v1721_v47, %v1690_v19  ;;  %v700_v0 = vld [vmem:[#allocation4 + $0x21] ss:$8 sm:$0x3]  ;;  %v1795_v31 = vrot.slane %v826_v7, %v1692_v21  ;;  %v1127_v40 = vld [vmem:[#allocation4 + $0x30] ss:$8 sm:$0x3] }
  0x87   : > { %v1772_v13 = vrot.slane %v700_v0, %v1690_v19 }
  0x88   : > { %v303_v28 = vadd.f32 %v297_v17, %v267_v14  ;;  %v1775_v14 = vrot.slane %v700_v0, %v1692_v21  ;;  %v896_v17 = vld [vmem:[#allocation4 + $0x22] ss:$8 sm:$0x3]  ;;  %v1836_v0 = vrot.slane %v1057_v34, %v1692_v21 }
  0x89   : > { %987 = vrot.lane.b32.xlu1 %v970_v15, %s1481_s23  ;;  %985 = vrot.lane.b32.xlu0 %v969_v16, %s1481_s23  ;;  %v299_v15 = vrot.slane %v289_v62, 2  ;;  %v325_v16 = vmul.f32 %v319_v56, %v310_v4  ;;  %v630_v56 = vld [vmem:[#allocation4 + $0x7] ss:$8 sm:$0x3]  ;;  %v1747_v62 = vrot.slane %v539_v46, %v1692_v21  ;;  %v1804_v36 = vrot.slane %v896_v17, %v1690_v19 }
  0x8a   : > { %v339_v45 = vadd.f32 %v333_v32, %v303_v28  ;;  %v1760_v8 = vrot.slane %v630_v56, %v1690_v19  ;;  %v1790_v28 = vld [vmem:[#allocation4 + $0x4] ss:$8 sm:$0x3]  ;;  %v1798_v32 = vrot.slane %v861_v12, %v1690_v19  ;;  %v1807_v37 = vrot.slane %v896_v17, %v1692_v21 }
  0x8b   : > { %v300_v27 = vsel %vm294_vm1, %v298_v9, %v299_v15  ;;  %v335_v30 = vrot.slane %v325_v16, 3  ;;  %v1763_v9 = vrot.slane %v630_v56, %v1692_v21  ;;  %v1778_v15 = vrot.slane %v735_v1, %v1690_v19 }
  0x8c   : > { %v304_v41 = vadd.f32 %v300_v27, %v268_v25  ;;  %v1753_v2 = vadd.f32 %v369_v51, %v339_v45  ;;  %v1781_v16 = vrot.slane %v735_v1, %v1692_v21  ;;  %v1788_v27 = vrot.slane %v826_v7, %v1690_v19 }
  0x8d   : > { %v336_v44 = vsel %vm330_vm2, %v334_v29, %v335_v30  ;;  %v1819_v45 = vrot.slane %v931_v18, %v1692_v21  ;;  %v1853_v56 = vrot.slane %v1127_v40, %v1692_v21 }
  0x8e   : > { %v340_v60 = vadd.f32 %v336_v44, %v304_v41 }
  0x8f   : > { %2084 = vst [vmem:[#allocation15_spill] sm:$0xff] %v1853_v56 }
  0x90   : > { %v376_v23 = vadd.f32 %v372_v55, %v340_v60 }
  0xcf   : > { %v394_v38 = vpop.permute.xlu1 %393  ;;  %v390_v39 = vpop.permute.xlu0 %389 }
  0xd3   : > { %v396_v58 = vpop.permute.xlu1 %395  ;;  %v392_v59 = vpop.permute.xlu0 %391 }
  0xd4   : > { %v402_v3 = vsel %vm401_vm4, %v390_v39, %v392_v59  ;;  %v403_v4 = vsel %vm401_vm4, %v392_v59, %v394_v38  ;;  %v1810_v38 = vrot.slane %v931_v18, %v1690_v19  ;;  %v1092_v39 = vld [vmem:[#allocation4 + $0x23] ss:$8 sm:$0x3] }
  0xd5   : > { %410 = vst [vmem:[#allocation2] sm:$0xff] %v402_v3  ;;  %411 = vst [vmem:[#allocation2 + $0x8] sm:$0xff] %v403_v4  ;;  %v429_v41 = vmul.f32 %v422_v42, %v402_v3  ;;  %v430_v44 = vmul.f32 %v426_v43, %v403_v4  ;;  %v1829_v42 = vrot.slane %v1022_v33, %v1692_v21 }
  0xd6   : > { %v1839_v1 = vrot.slane %v1092_v39, %v1690_v19  ;;  %v1842_v3 = vrot.slane %v1127_v40, %v1690_v19 }
  0xd7   : > { %v400_v20 = vpop.permute.xlu1 %399  ;;  %v398_v22 = vpop.permute.xlu0 %397  ;;  %v431_v33 = vadd.f32 %v429_v41, %v1753_v2  ;;  %v432_v34 = vadd.f32 %v430_v44, %v376_v23 }
  0xd8   : > { %v404_v29 = vsel %vm401_vm4, %v396_v58, %v398_v22  ;;  %v405_v30 = vsel %vm401_vm4, %v398_v22, %v400_v20  ;;  %2082 = vst [vmem:[#allocation13_spill] sm:$0xff] %v1842_v3  ;;  %v1848_v22 = vrot.slane %v1092_v39, %v1692_v21 }
  0xd9   : > { %412 = vst [vmem:[#allocation2 + $0x10] sm:$0xf] %v404_v29  ;;  %413 = vst [vmem:[#allocation2 + $0x18] sm:$0xf] %v405_v30 }
  0xda   : > { %2083 = vst [vmem:[#allocation14_spill] sm:$0xff] %v1848_v22 }
  0xdb   : > { %v588_v51 = vpop.permute.xlu1 %587  ;;  %v586_v55 = vpop.permute.xlu0 %585 }
  0xdc   : > { %v435_v43 = vld [vmem:[#allocation2] sm:$0xfe]  ;;  %v436_v58 = vld [vmem:[#allocation2 + $0x8] sm:$0xfe]  ;;  %v598_v60 = vsel %vm597_vm5, %v586_v55, %v588_v51 }
  0xdd   : > { %v470_v59 = vld [vmem:[#allocation2] sm:$0xfc]  ;;  %v471_v4 = vld [vmem:[#allocation2 + $0x8] sm:$0xfc]  ;;  %v450_v17 = vmul.f32 %v1724_v48, %v435_v43  ;;  %v451_v18 = vmul.f32 %v1727_v49, %v436_v58  ;;  %v1858_v39 = vmul.f32 %v618_v63, %v598_v60 }
  0xde   : > { %v505_v7 = vld [vmem:[#allocation2] sm:$0xf8]  ;;  %v506_v12 = vld [vmem:[#allocation2 + $0x8] sm:$0xf8]  ;;  %v485_v20 = vmul.f32 %v1730_v50, %v470_v59  ;;  %v486_v55 = vmul.f32 %v1734_v52, %v471_v4 }
  0xdf   : > { %v540_v29 = vld [vmem:[#allocation2] sm:$0xf0]  ;;  %v541_v30 = vld [vmem:[#allocation2 + $0x8] sm:$0xf0]  ;;  %v458_v46 = vrot.slane %v450_v17, 1  ;;  %v461_v43 = vrot.slane %v451_v18, 1  ;;  %v592_v58 = vpop.permute.xlu1 %591  ;;  %v590_v59 = vpop.permute.xlu0 %589  ;;  %v520_v41 = vmul.f32 %v1737_v53, %v505_v7  ;;  %v521_v40 = vmul.f32 %v1740_v54, %v506_v12 }
  0xe0   : > { %v493_v25 = vrot.slane %v485_v20, 2  ;;  %606 = vst [vmem:[#allocation2] sm:$0xff] %v598_v60  ;;  %v437_v24 = vld [vmem:[#allocation2 + $0x10] sm:$0x1]  ;;  %v438_v5 = vld [vmem:[#allocation2 + $0x18] sm:$0x1]  ;;  %v599_v23 = vsel %vm597_vm5, %v588_v51, %v590_v59  ;;  %v1864_v44 = vmul.f32 %v1744_v61, %v540_v29  ;;  %v556_v20 = vmul.f32 %v1747_v62, %v541_v30 }
  0xe1   : > { %v472_v2 = vld [vmem:[#allocation2 + $0x10] sm:$0x3]  ;;  %v452_v4 = vmul.f32 %v1724_v48, %v437_v24  ;;  %v453_v17 = vmul.f32 %v1727_v49, %v438_v5  ;;  %v473_v18 = vld [vmem:[#allocation2 + $0x18] sm:$0x3]  ;;  %607 = vst [vmem:[#allocation2 + $0x8] sm:$0xff] %v599_v23  ;;  %v496_v59 = vrot.slane %v486_v55, 2  ;;  %v2085_v29 = vrot.slane %v1721_v47, %v1692_v21 }
  0xe2   : > { %v487_v63 = vmul.f32 %v1730_v50, %v472_v2  ;;  %v507_v60 = vld [vmem:[#allocation2 + $0x10] sm:$0x7]  ;;  %v488_v51 = vmul.f32 %v1734_v52, %v473_v18  ;;  %v508_v7 = vld [vmem:[#allocation2 + $0x18] sm:$0x7] }
  0xe3   : > { %v522_v12 = vmul.f32 %v1737_v53, %v507_v60  ;;  %v1875_v56 = vmul.f32 %v2085_v29, %v599_v23  ;;  %v459_v48 = vrot.slane %v452_v4, 1  ;;  %v462_v49 = vrot.slane %v453_v17, 1  ;;  %v596_v24 = vpop.permute.xlu1 %595  ;;  %v594_v2 = vpop.permute.xlu0 %593  ;;  %v542_v30 = vld [vmem:[#allocation2 + $0x10] sm:$0xf]  ;;  %v543_v22 = vld [vmem:[#allocation2 + $0x18] sm:$0xf] }
  0xe4   : > { %v494_v5 = vrot.slane %v487_v63, 2  ;;  %v523_v50 = vmul.f32 %v1740_v54, %v508_v7  ;;  %v497_v3 = vrot.slane %v488_v51, 2  ;;  %v600_v52 = vsel %vm597_vm5, %v592_v58, %v594_v2 }
  0xe5   : > { %v601_v55 = vsel %vm597_vm5, %v594_v2, %v596_v24  ;;  %v528_v53 = vrot.slane %v520_v41, 3  ;;  %v460_v18 = vsel %vm258_vm0, %v458_v46, %v459_v48  ;;  %v463_v47 = vsel %vm258_vm0, %v461_v43, %v462_v49  ;;  %608 = vst [vmem:[#allocation2 + $0x10] sm:$0xf] %v600_v52 }
  0xe6   : > { %v495_v23 = vsel %vm294_vm1, %v493_v25, %v494_v5  ;;  %609 = vst [vmem:[#allocation2 + $0x18] sm:$0xf] %v601_v55  ;;  %v529_v4 = vrot.slane %v522_v12, 3  ;;  %v466_v54 = vadd.f32 %v460_v18, %v431_v33  ;;  %v467_v17 = vadd.f32 %v463_v47, %v432_v34 }
  0xe7   : > { %v498_v63 = vsel %vm294_vm1, %v496_v59, %v497_v3  ;;  %v531_v60 = vrot.slane %v521_v40, 3  ;;  %v631_v51 = vld [vmem:[#allocation2] sm:$0xfe]  ;;  %v784_v58 = vpop.permute.xlu1 %783  ;;  %v782_v29 = vpop.permute.xlu0 %781  ;;  %v532_v24 = vrot.slane %v523_v50, 3  ;;  %v557_v46 = vmul.f32 %v1744_v61, %v542_v30 }
  0xe8   : > { %v666_v7 = vld [vmem:[#allocation2] sm:$0xfc]  ;;  %v530_v41 = vsel %vm330_vm2, %v528_v53, %v529_v4  ;;  %v558_v43 = vmul.f32 %v1747_v62, %v543_v22  ;;  %v501_v12 = vadd.f32 %v495_v23, %v466_v54  ;;  %v502_v33 = vadd.f32 %v498_v63, %v467_v17  ;;  %v632_v40 = vld [vmem:[#allocation2 + $0x8] sm:$0xfe] }
  0xe9   : > { %v701_v25 = vld [vmem:[#allocation2] sm:$0xf8]  ;;  %v1890_v34 = vsel %vm793_vm6, %v782_v29, %v784_v58  ;;  %v563_v3 = vrot.slane %v1864_v44, 4  ;;  %v667_v59 = vld [vmem:[#allocation2 + $0x8] sm:$0xfc]  ;;  %v533_v49 = vsel %vm330_vm2, %v531_v60, %v532_v24  ;;  %v564_v5 = vrot.slane %v557_v46, 4 }
  0xea   : > { %v1887_v48 = vld [vmem:[#allocation2] sm:$0xf0]  ;;  %v566_v50 = vrot.slane %v556_v20, 4  ;;  %v567_v61 = vrot.slane %v558_v43, 4  ;;  %v536_v62 = vadd.f32 %v530_v41, %v501_v12  ;;  %v537_v22 = vadd.f32 %v533_v49, %v502_v33  ;;  %v702_v20 = vld [vmem:[#allocation2 + $0x8] sm:$0xf8] }
  0xeb   : > { %802 = vst [vmem:[#allocation2] sm:$0xff] %v1890_v34  ;;  %v646_v2 = vmul.f32 %v1760_v8, %v631_v51  ;;  %v647_v30 = vmul.f32 %v1763_v9, %v632_v40  ;;  %v788_v52 = vpop.permute.xlu1 %787  ;;  %v786_v55 = vpop.permute.xlu0 %785  ;;  %v565_v44 = vsel %vm366_vm3, %v563_v3, %v564_v5  ;;  %v681_v18 = vmul.f32 %v1766_v10, %v666_v7  ;;  %v737_v23 = vld [vmem:[#allocation2 + $0x8] sm:$0xf0] }
  0xec   : > { %v568_v53 = vsel %vm366_vm3, %v566_v50, %v567_v61  ;;  %v682_v47 = vmul.f32 %v1769_v11, %v667_v59  ;;  %v1902_v4 = vsel %vm793_vm6, %v784_v58, %v786_v55  ;;  %v571_v54 = vadd.f32 %v565_v44, %v536_v62  ;;  %v633_v63 = vld [vmem:[#allocation2 + $0x10] sm:$0x1] }
  0xed   : > { %v572_v17 = vadd.f32 %v568_v53, %v537_v22  ;;  %v634_v60 = vld [vmem:[#allocation2 + $0x18] sm:$0x1]  ;;  %v654_v51 = vrot.slane %v646_v2, 1  ;;  %v648_v29 = vmul.f32 %v1760_v8, %v633_v63  ;;  %v657_v24 = vrot.slane %v647_v30, 1  ;;  %v668_v46 = vld [vmem:[#allocation2 + $0x10] sm:$0x3] }
  0xee   : > { %v649_v41 = vmul.f32 %v1763_v9, %v634_v60  ;;  %v669_v43 = vld [vmem:[#allocation2 + $0x18] sm:$0x3]  ;;  %v689_v7 = vrot.slane %v681_v18, 2  ;;  %803 = vst [vmem:[#allocation2 + $0x8] sm:$0xff] %v1902_v4  ;;  %v627_v12 = vadd.f32 %v1858_v39, %v571_v54  ;;  %v683_v33 = vmul.f32 %v1766_v10, %v668_v46  ;;  %v703_v40 = vld [vmem:[#allocation2 + $0x10] sm:$0x7] }
  0xef   : > { %v628_v58 = vadd.f32 %v1875_v56, %v572_v17  ;;  %v684_v3 = vmul.f32 %v1769_v11, %v669_v43  ;;  %v792_v59 = vpop.permute.xlu1 %791  ;;  %v790_v49 = vpop.permute.xlu0 %789  ;;  %v655_v8 = vrot.slane %v648_v29, 1  ;;  %v692_v9 = vrot.slane %v682_v47, 2  ;;  %v704_v50 = vld [vmem:[#allocation2 + $0x18] sm:$0x7]  ;;  %v738_v56 = vld [vmem:[#allocation2 + $0x10] sm:$0xf] }
  0xf0   : > { %v658_v5 = vrot.slane %v649_v41, 1  ;;  %v716_v61 = vmul.f32 %v1772_v13, %v701_v25  ;;  %v796_v62 = vsel %vm793_vm6, %v788_v52, %v790_v49  ;;  %v797_v22 = vsel %vm793_vm6, %v790_v49, %v792_v59  ;;  %v739_v30 = vld [vmem:[#allocation2 + $0x18] sm:$0xf] }
  0xf1   : > { %v690_v39 = vrot.slane %v683_v33, 2  ;;  %v693_v2 = vrot.slane %v684_v3, 2  ;;  %v656_v10 = vsel %vm258_vm0, %v654_v51, %v655_v8  ;;  %v717_v55 = vmul.f32 %v1775_v14, %v702_v20  ;;  %804 = vst [vmem:[#allocation2 + $0x10] sm:$0xf] %v796_v62  ;;  %805 = vst [vmem:[#allocation2 + $0x18] sm:$0xf] %v797_v22 }
  0xf2   : > { %v659_v11 = vsel %vm258_vm0, %v657_v24, %v658_v5  ;;  %v718_v44 = vmul.f32 %v1772_v13, %v703_v40  ;;  %v662_v53 = vadd.f32 %v656_v10, %v627_v12  ;;  %v719_v17 = vmul.f32 %v1775_v14, %v704_v50  ;;  %v827_v29 = vld [vmem:[#allocation2] sm:$0xfe] }
  0xf3   : > { %v663_v25 = vadd.f32 %v659_v11, %v628_v58  ;;  %v691_v52 = vsel %vm294_vm1, %v689_v7, %v690_v39  ;;  %v694_v18 = vsel %vm294_vm1, %v692_v9, %v693_v2  ;;  %v980_v47 = vpop.permute.xlu1 %979  ;;  %v978_v54 = vpop.permute.xlu0 %977  ;;  %v724_v63 = vrot.slane %v716_v61, 3  ;;  %v862_v46 = vld [vmem:[#allocation2] sm:$0xfc] }
  0xf4   : > { %v725_v60 = vrot.slane %v718_v44, 3  ;;  %v727_v51 = vrot.slane %v717_v55, 3  ;;  %v1922_v20 = vsel %vm989_vm7, %v978_v54, %v980_v47  ;;  %v697_v13 = vadd.f32 %v691_v52, %v662_v53  ;;  %v1926_v43 = vld [vmem:[#allocation2] sm:$0xf8] }
  0xf5   : > { %v698_v41 = vadd.f32 %v694_v18, %v663_v25  ;;  %v751_v24 = vmul.f32 %v1778_v15, %v1887_v48  ;;  %v1928_v7 = vld [vmem:[#allocation2] sm:$0xf0]  ;;  %v728_v14 = vrot.slane %v719_v17, 3  ;;  %v752_v58 = vmul.f32 %v1781_v16, %v737_v23  ;;  %v828_v8 = vld [vmem:[#allocation2 + $0x8] sm:$0xfe] }
  0xf6   : > { %v726_v12 = vsel %vm330_vm2, %v724_v63, %v725_v60  ;;  %v753_v33 = vmul.f32 %v1778_v15, %v738_v56  ;;  %998 = vst [vmem:[#allocation2] sm:$0xff] %v1922_v20  ;;  %v754_v40 = vmul.f32 %v1781_v16, %v739_v30  ;;  %v2086_v48 = vrot.slane %v1757_v6, %v1690_v19  ;;  %v863_v5 = vld [vmem:[#allocation2 + $0x8] sm:$0xfc] }
  0xf7   : > { %v732_v3 = vadd.f32 %v726_v12, %v697_v13  ;;  %v759_v59 = vrot.slane %v751_v24, 4  ;;  %v984_v9 = vpop.permute.xlu1 %983  ;;  %v982_v50 = vpop.permute.xlu0 %981  ;;  %v729_v61 = vsel %vm330_vm2, %v727_v51, %v728_v14  ;;  %v762_v62 = vrot.slane %v752_v58, 4  ;;  %v898_v16 = vld [vmem:[#allocation2 + $0x8] sm:$0xf8] }
  0xf8   : > { %v821_v49 = vmul.f32 %v2086_v48, %v1890_v34  ;;  %v760_v23 = vrot.slane %v753_v33, 4  ;;  %v2087_v15 = vrot.slane %v1757_v6, %v1692_v21  ;;  %v933_v39 = vld [vmem:[#allocation2 + $0x8] sm:$0xf0]  ;;  %v1945_v2 = vsel %vm989_vm7, %v980_v47, %v982_v50  ;;  %v829_v30 = vld [vmem:[#allocation2 + $0x10] sm:$0x1] }
  0xf9   : > { %v733_v56 = vadd.f32 %v729_v61, %v698_v41  ;;  %v763_v34 = vrot.slane %v754_v40, 4  ;;  %v830_v10 = vld [vmem:[#allocation2 + $0x18] sm:$0x1]  ;;  %v842_v11 = vmul.f32 %v1788_v27, %v827_v29  ;;  %v843_v44 = vmul.f32 %v1795_v31, %v828_v8  ;;  %999 = vst [vmem:[#allocation2 + $0x8] sm:$0xff] %v1945_v2  ;;  %v864_v18 = vld [vmem:[#allocation2 + $0x10] sm:$0x3] }
  0xfa   : > { %v822_v22 = vmul.f32 %v2087_v15, %v1902_v4  ;;  %v761_v55 = vsel %vm366_vm3, %v759_v59, %v760_v23  ;;  %v844_v53 = vmul.f32 %v1788_v27, %v829_v30  ;;  %v845_v6 = vmul.f32 %v1795_v31, %v830_v10  ;;  %v865_v47 = vld [vmem:[#allocation2 + $0x18] sm:$0x3]  ;;  %v899_v41 = vld [vmem:[#allocation2 + $0x10] sm:$0x7] }
  0xfb   : > { %v764_v4 = vsel %vm366_vm3, %v762_v62, %v763_v34  ;;  %v767_v25 = vadd.f32 %v761_v55, %v732_v3  ;;  %v850_v52 = vrot.slane %v842_v11, 1  ;;  %v877_v54 = vmul.f32 %v1798_v32, %v862_v46  ;;  %v988_v17 = vpop.permute.xlu1 %987  ;;  %v986_v63 = vpop.permute.xlu0 %985  ;;  %v900_v14 = vld [vmem:[#allocation2 + $0x18] sm:$0x7]  ;;  %v934_v58 = vld [vmem:[#allocation2 + $0x10] sm:$0xf] }
  0xfc   : > { %v768_v60 = vadd.f32 %v764_v4, %v733_v56  ;;  %v851_v51 = vrot.slane %v844_v53, 1  ;;  %v853_v29 = vrot.slane %v843_v44, 1  ;;  %v854_v13 = vrot.slane %v845_v6, 1  ;;  %v935_v33 = vld [vmem:[#allocation2 + $0x18] sm:$0xf] }
  0xfd   : > { %v992_v27 = vsel %vm989_vm7, %v984_v9, %v986_v63  ;;  %v993_v31 = vsel %vm989_vm7, %v986_v63, %v988_v17  ;;  %v823_v24 = vadd.f32 %v821_v49, %v767_v25  ;;  %v878_v12 = vmul.f32 %v1801_v35, %v863_v5 }
  0xfe   : > { %v824_v3 = vadd.f32 %v822_v22, %v768_v60  ;;  %v852_v46 = vsel %vm258_vm0, %v850_v52, %v851_v51  ;;  %v855_v40 = vsel %vm258_vm0, %v853_v29, %v854_v13  ;;  %v879_v59 = vmul.f32 %v1798_v32, %v864_v18  ;;  %1000 = vst [vmem:[#allocation2 + $0x10] sm:$0xf] %v992_v27 }
  0xff   : > { %1001 = vst [vmem:[#allocation2 + $0x18] sm:$0xf] %v993_v31  ;;  %v858_v48 = vadd.f32 %v852_v46, %v823_v24  ;;  %v880_v8 = vmul.f32 %v1801_v35, %v865_v47  ;;  %v885_v9 = vrot.slane %v877_v54, 2  ;;  %v888_v50 = vrot.slane %v878_v12, 2 }
 0x100   : > { %v859_v49 = vadd.f32 %v855_v40, %v824_v3  ;;  %v886_v61 = vrot.slane %v879_v59, 2  ;;  %v912_v5 = vmul.f32 %v1804_v36, %v1926_v43  ;;  %v913_v23 = vmul.f32 %v1807_v37, %v898_v16  ;;  %v1023_v16 = vld [vmem:[#allocation2] sm:$0xfe]  ;;  %v1024_v6 = vld [vmem:[#allocation2 + $0x8] sm:$0xfe] }
 0x101   : > { %v889_v62 = vrot.slane %v880_v8, 2  ;;  %v914_v15 = vmul.f32 %v1804_v36, %v899_v41  ;;  %v915_v22 = vmul.f32 %v1807_v37, %v900_v14  ;;  %v947_v32 = vmul.f32 %v1810_v38, %v1928_v7  ;;  %v1058_v7 = vld [vmem:[#allocation2] sm:$0xfc]  ;;  %v1059_v27 = vld [vmem:[#allocation2 + $0x8] sm:$0xfc] }
 0x102   : > { %v887_v56 = vsel %vm294_vm1, %v885_v9, %v886_v61  ;;  %v920_v35 = vrot.slane %v912_v5, 3  ;;  %v923_v34 = vrot.slane %v913_v23, 3  ;;  %v948_v30 = vmul.f32 %v1819_v45, %v933_v39  ;;  %v1093_v40 = vld [vmem:[#allocation2] sm:$0xf8]  ;;  %v1094_v9 = vld [vmem:[#allocation2 + $0x8] sm:$0xf8] }
 0x103   : > { %v890_v10 = vsel %vm294_vm1, %v888_v50, %v889_v62  ;;  %v893_v11 = vadd.f32 %v887_v56, %v858_v48  ;;  %v921_v43 = vrot.slane %v914_v15, 3  ;;  %v924_v55 = vrot.slane %v915_v22, 3  ;;  %v1128_v15 = vld [vmem:[#allocation2] sm:$0xf0] }
 0x104   : > { %v894_v44 = vadd.f32 %v890_v10, %v859_v49  ;;  %v949_v36 = vmul.f32 %v1810_v38, %v934_v58  ;;  %v950_v37 = vmul.f32 %v1819_v45, %v935_v33  ;;  %v955_v53 = vrot.slane %v947_v32, 4 }
 0x105   : > { %v922_v4 = vsel %vm330_vm2, %v920_v35, %v921_v43  ;;  %v925_v25 = vsel %vm330_vm2, %v923_v34, %v924_v55  ;;  %v958_v52 = vrot.slane %v948_v30, 4  ;;  %v2088_v39 = vrot.slane %v1790_v28, %v1690_v19  ;;  %v1025_v47 = vld [vmem:[#allocation2 + $0x10] sm:$0x1]  ;;  %v2090_v34 = vld [vmem:[#allocation14_spill] sm:$0xff] }
 0x106   : > { %v1026_v54 = vld [vmem:[#allocation2 + $0x18] sm:$0x1]  ;;  %v928_v17 = vadd.f32 %v922_v4, %v893_v11  ;;  %v929_v63 = vadd.f32 %v925_v25, %v894_v44  ;;  %v956_v38 = vrot.slane %v949_v36, 4  ;;  %v959_v60 = vrot.slane %v950_v37, 4  ;;  %v1060_v19 = vld [vmem:[#allocation2 + $0x10] sm:$0x3] }
 0x107   : > { %v1017_v18 = vmul.f32 %v2088_v39, %v1922_v20  ;;  %v2089_v45 = vrot.slane %v1790_v28, %v1692_v21  ;;  %v1038_v29 = vmul.f32 %v1826_v57, %v1023_v16  ;;  %v1039_v13 = vmul.f32 %v1829_v42, %v1024_v6  ;;  %v1061_v12 = vld [vmem:[#allocation2 + $0x18] sm:$0x3]  ;;  %v1095_v50 = vld [vmem:[#allocation2 + $0x10] sm:$0x7]  ;;  %v1129_v11 = vld [vmem:[#allocation2 + $0x8] sm:$0xf0] }
 0x108   : > { %v1040_v41 = vmul.f32 %v1826_v57, %v1025_v47  ;;  %v957_v20 = vsel %vm366_vm3, %v955_v53, %v956_v38  ;;  %v960_v31 = vsel %vm366_vm3, %v958_v52, %v959_v60  ;;  %v1041_v24 = vmul.f32 %v1829_v42, %v1026_v54  ;;  %v1096_v49 = vld [vmem:[#allocation2 + $0x18] sm:$0x7]  ;;  %v1130_v43 = vld [vmem:[#allocation2 + $0x10] sm:$0xf]  ;;  %v2091_v37 = vld [vmem:[#allocation13_spill] sm:$0xff] }
 0x109   : > { %v1018_v51 = vmul.f32 %v2089_v45, %v1945_v2  ;;  %v1073_v14 = vmul.f32 %v1832_v26, %v1058_v7  ;;  %v963_v58 = vadd.f32 %v957_v20, %v928_v17  ;;  %v964_v21 = vadd.f32 %v960_v31, %v929_v63  ;;  %v1131_v55 = vld [vmem:[#allocation2 + $0x18] sm:$0xf]  ;;  %v2092_v52 = vld [vmem:[#allocation15_spill] sm:$0xff] }
 0x10a   : > { %v1046_v28 = vrot.slane %v1038_v29, 1  ;;  %v1047_v2 = vrot.slane %v1040_v41, 1  ;;  %v1049_v33 = vrot.slane %v1039_v13, 1  ;;  %v1050_v3 = vrot.slane %v1041_v24, 1 }
 0x10b   : > { %v1074_v57 = vmul.f32 %v1836_v0, %v1059_v27  ;;  %v1075_v46 = vmul.f32 %v1832_v26, %v1060_v19  ;;  %v1019_v59 = vadd.f32 %v1017_v18, %v963_v58  ;;  %v1020_v48 = vadd.f32 %v1018_v51, %v964_v21 }
 0x10c   : > { %v1048_v8 = vsel %vm258_vm0, %v1046_v28, %v1047_v2  ;;  %v1076_v42 = vmul.f32 %v1836_v0, %v1061_v12  ;;  %v1051_v61 = vsel %vm258_vm0, %v1049_v33, %v1050_v3  ;;  %v1081_v5 = vrot.slane %v1073_v14, 2 }
 0x10d   : > { %v1082_v23 = vrot.slane %v1075_v46, 2  ;;  %v1084_v62 = vrot.slane %v1074_v57, 2  ;;  %v1054_v22 = vadd.f32 %v1048_v8, %v1019_v59  ;;  %v1055_v32 = vadd.f32 %v1051_v61, %v1020_v48 }
 0x10e   : > { %v1085_v26 = vrot.slane %v1076_v42, 2  ;;  %v1108_v56 = vmul.f32 %v1839_v1, %v1093_v40  ;;  %v1109_v30 = vmul.f32 %v2090_v34, %v1094_v9  ;;  %v1110_v0 = vmul.f32 %v1839_v1, %v1095_v50 }
 0x10f   : > { %v1083_v35 = vsel %vm294_vm1, %v1081_v5, %v1082_v23  ;;  %v1111_v10 = vmul.f32 %v2090_v34, %v1096_v49  ;;  %v1143_v53 = vmul.f32 %v2091_v37, %v1128_v15  ;;  %v1144_v39 = vmul.f32 %v2092_v52, %v1129_v11 }
 0x110   : > { %v1086_v16 = vsel %vm294_vm1, %v1084_v62, %v1085_v26  ;;  %v1089_v44 = vadd.f32 %v1083_v35, %v1054_v22  ;;  %v1116_v36 = vrot.slane %v1108_v56, 3  ;;  %v1117_v7 = vrot.slane %v1110_v0, 3 }
 0x111   : > { %v1090_v6 = vadd.f32 %v1086_v16, %v1055_v32  ;;  %v1119_v4 = vrot.slane %v1109_v30, 3  ;;  %v1120_v25 = vrot.slane %v1111_v10, 3  ;;  %v1145_v1 = vmul.f32 %v2091_v37, %v1130_v43 }
 0x112   : > { %v1146_v18 = vmul.f32 %v2092_v52, %v1131_v55  ;;  %v1118_v47 = vsel %vm330_vm2, %v1116_v36, %v1117_v7  ;;  %v1151_v38 = vrot.slane %v1143_v53, 4  ;;  %v1154_v45 = vrot.slane %v1144_v39, 4 }
 0x113   : > { %v1121_v54 = vsel %vm330_vm2, %v1119_v4, %v1120_v25  ;;  %v1124_v17 = vadd.f32 %v1118_v47, %v1089_v44  ;;  %v1152_v60 = vrot.slane %v1145_v1, 4 }
 0x114   : > { %v1125_v63 = vadd.f32 %v1121_v54, %v1090_v6  ;;  %v1155_v51 = vrot.slane %v1146_v18, 4 }
 0x115   : > { %v1153_v29 = vsel %vm366_vm3, %v1151_v38, %v1152_v60 }
 0x116   : > { %v1156_v13 = vsel %vm366_vm3, %v1154_v45, %v1155_v51  ;;  %v1159_v41 = vadd.f32 %v1153_v29, %v1124_v17 }
 0x117   : > { %v1160_v27 = vadd.f32 %v1156_v13, %v1125_v63 }
 0x118   : > { %1161 = vst [vmem:[%s204_s10] sm:$0xff] %v1159_v41 }
 0x119   : > { %1162 = vst [vmem:[%s204_s10 + $0x8] sm:$0xff] %v1160_v27 }
 0x11a   : > { %1413 = shalt.err (!%p1410_p7)
}
 0x11b   : > { %s1414_s26 = scalar_lea.hbm %s2017_s28, 256  ;;  %s1418_s21 = scalar_lea.hbm %s2064_s3, 512 }
 0x11c   : > { %p1415_p9 = scmp.ne.s32.totalorder %s2017_s28, %s1414_s26  ;;  %p1419_p5 = scmp.lt.u32.totalorder %s2017_s28, %s2064_s3 }
 0x11d   : > { %p1420_p1 = scmp.lt.u32.totalorder %s1418_s21, %s1414_s26  ;;  %p1422_p4 = scmp.lt.u32.totalorder %s1414_s26, %s2017_s28 }
 0x11e   : > { %p1416_p2 = pnand %p1415_p9, %p1597_p12 }
 0x11f   : > { %p1421_p11 = por %p1420_p1, %p1419_p5 }
 0x120   : > { %p1417_p0 = pneg %p1416_p2 }
 0x121   : > { %p1423_p6 = por %p1422_p4, %p1421_p11 }
 0x123   : > { %p1424_p8 = pnand %p1423_p6, %p1417_p0 }
 0x125   : > { %1427 = shalt.err (!%p1424_p8)
}
 0x126   : > { %1283 = dma.vmem_to_hbm [thread:$0]  (%p1597_p12), %s2019_s11, 256, %s2017_s28, %s1164_s1  }
 0x127 PF: > { %s1190_s23 = sand.u32 1, %s1458_s14   ;;  %p2093_p10 = scmp.ne.s32.totalorder %s2072_s20, 0 }
 0x128   : > { %p2094_p13 = scmp.ge.s32.totalorder %s1470_s17, 2  ;;  %s1191_s27 = scalar_lea.sflag [#allocation6], %s1190_s23 }
 0x12a   : > { %p1294_p3 = pnand %p2094_p13, %p2093_p10 }
 0x12c   : > { %1453 = dma.done.wait (!%p1294_p3), %s1191_s27, 256  }
 0x12d   : > { %1455 = vsyncadd (!%p1294_p3), %s1191_s27, 4294967040  ;;  %p18_p7 = scmp.ge.s32.totalorder %s1562_s25, 4   ;;  %s2095_s14 = smov %s1462_s15 }
 0x12e   : > { %s2096_s15 = smov %s1466_s16  ;;  %s2097_s16 = smov %s1593_s13 }
 0x12f   : > { %s2098_s17 = smov %s1562_s25  ;;  %20 = sbr.rel (!%p18_p7) target bundleno = 8 (0x8), region = 106 }
 0x136   :  { %1196 = vsyncpa [#allocation5], 1 }
 0x137   :  { %1198 = vsyncpa [#allocation5 + $0x1], 1 }
 0x138   :  { %1199 = vsyncpa [#allocation8], 1 }
 0x139   :  { %1201 = vsyncpa [#allocation8 + $0x1], 1 }
 0x13a   :  { %1202 = vsyncpa [#allocation6], 1 }
 0x13b   :  { %1204 = vsyncpa [#allocation6 + $0x1], 1 }

</bundles_post_ra>
